<compile_context>
chip_gen: v5e
topology: v5e:2x2
jax: 0.10.0
libtpu: 0.0.40
codegen_flags: <defaults>
</compile_context>

<pallas_src>
import functools
import math

import jax
import jax.numpy as jnp
import numpy as np
from jax.experimental import pallas as pl
from jax.experimental.pallas import tpu as pltpu


def bilstm_kernel(xflat_ref, wih_f_ref, whh_f_ref, b_f_ref,
                  wih_b_ref, b_b_ref,
                  wfc1_f_ref, wfc1_b_ref, bfc1_ref, wfc2_ref, bfc2_ref,
                  out_ref, *, T, Bp, H):
    f32 = jnp.float32
    bf16 = jnp.bfloat16

    xflat = xflat_ref[...]                                   # (T*Bp, I) bf16

    # ---- Hoisted input projection: one MXU op covers all T steps, bias folded in.
    # NOTE(v7x): at large T*Bp this (T*Bp, 4H) f32 buffer must be chunked over T
    # (or kept bf16) to respect the 64 MiB VMEM budget; irrelevant at these shapes.
    gates_x = (jnp.dot(xflat, wih_f_ref[...], preferred_element_type=f32)
               + b_f_ref[...])                               # (T*Bp, 4H) f32

    # ---- Reverse direction: the head only reads lstm_out[:, -1, H:], which is a
    # single backward cell step on x[T-1] from the zero state (h0==0 => h0@Whh==0,
    # f*c0==0).  Issued before the forward loop so it hides under the loop fill.
    x_last = xflat[(T - 1) * Bp:T * Bp, :]                   # (Bp, I)
    g_b = (jnp.dot(x_last, wih_b_ref[...], preferred_element_type=f32)
           + b_b_ref[...])                                   # (Bp, 4H)
    s_b = jax.nn.sigmoid(g_b)
    t_b = jnp.tanh(g_b)
    c_b = s_b[:, 0:H] * t_b[:, 2 * H:3 * H]                  # i * g
    h_bwd = s_b[:, 3 * H:4 * H] * jnp.tanh(c_b)              # o * tanh(c)
    hid_b = (jnp.dot(h_bwd.astype(bf16), wfc1_b_ref[...],
                     preferred_element_type=f32) + bfc1_ref[...])   # (Bp, H)

    whh_f = whh_f_ref[...]                                   # (H, 4H) bf16

    # ---- Forward recurrence: fully unrolled, static sublane-aligned slices.
    # TODO(synk): hold Whh_f in the MXU weight registers across all T steps via
    # pltpu.matmul_push_rhs / matmul_acc_lhs / matmul_pop once the MRF (v5e/v6e,
    # sequential pop) vs MRB (v7x, addressed accumulator) semantics are validated;
    # that removes the ~128-256 weight-push cycles per step from the serial chain.
    # NOTE: the ~3 lane rotations/step from the i/f/g/o slices are the minimum for
    # this fused 2-transcendental form; the per-gate-split alternative trades them
    # for 2 extra EUP issues/step - keep this form (also preferred on v5e).
    # NOTE: if T ever grows beyond ~16, switch to lax.fori_loop(..., unroll=2..4)
    # over pl.ds slices of gates_x to bound vreg live ranges and compile time.
    h = jnp.zeros((Bp, H), f32)
    c = jnp.zeros((Bp, H), f32)
    for t in range(T):
        gates = (gates_x[t * Bp:(t + 1) * Bp, :]
                 + jnp.dot(h.astype(bf16), whh_f, preferred_element_type=f32))
        s = jax.nn.sigmoid(gates)                            # i, f, o in one issue
        tg = jnp.tanh(gates)                                 # g in one issue
        c = s[:, H:2 * H] * c + s[:, 0:H] * tg[:, 2 * H:3 * H]
        h = s[:, 3 * H:4 * H] * jnp.tanh(c)

    # ---- Head: fc1 forward half + precomputed reverse partial, ReLU, fc2.
    # Dropout / input noise are identity in eval mode.
    hid = (jnp.dot(h.astype(bf16), wfc1_f_ref[...], preferred_element_type=f32)
           + hid_b)
    hid = jnp.maximum(hid, 0.0)
    # wfc2/bfc2 are zero-padded to 128 output lanes -> lane-dense (unmasked) store.
    out = (jnp.dot(hid.astype(bf16), wfc2_ref[...], preferred_element_type=f32)
           + bfc2_ref[...])
    out_ref[...] = out.astype(out_ref.dtype)


def pack_params(params):
    """One-time packing of PyTorch-layout weights into kernel layout.

    Call once at model-load time (NOT per forward call): all transposes, casts,
    bias folding and fc2 lane-padding are hoisted out of the forward path.
    """
    f32, bf16 = jnp.float32, jnp.bfloat16
    H = params["w_hh_f"].shape[1]
    O = params["w_fc2"].shape[0]
    OP = ((O + 127) // 128) * 128                 # lane-dense fc2 output width
    return {
        "wih_f": params["w_ih_f"].T.astype(bf16),                          # (I, 4H)
        "whh_f": params["w_hh_f"].T.astype(bf16),                          # (H, 4H)
        "b_f": (params["b_ih_f"] + params["b_hh_f"])[None, :].astype(f32),
        "wih_b": params["w_ih_b"].T.astype(bf16),                          # (I, 4H)
        "b_b": (params["b_ih_b"] + params["b_hh_b"])[None, :].astype(f32),
        "wfc1_f": params["w_fc1"][:, :H].T.astype(bf16),                   # (H, H)
        "wfc1_b": params["w_fc1"][:, H:].T.astype(bf16),                   # (H, H)
        "bfc1": params["b_fc1"][None, :].astype(f32),                      # (1, H)
        "wfc2": jnp.pad(params["w_fc2"].T, ((0, 0), (0, OP - O))).astype(bf16),
        "bfc2": jnp.pad(params["b_fc2"], (0, OP - O))[None, :].astype(f32),
    }


@functools.partial(jax.jit, static_argnames=("out_size",))
def bilstm_predictor_forward(x, packed, *, out_size):
    """x: (B, T, input_size) float32; packed: output of pack_params (eval mode)."""
    B, T, I = x.shape
    H = packed["whh_f"].shape[0]
    OP = packed["wfc2"].shape[1]
    Bp = ((B + 7) // 8) * 8                  # pad batch to full sublane groups

    # Only x prep remains per call; under jit it fuses into a couple of XLA ops.
    xt = jnp.transpose(x, (1, 0, 2))                           # (T, B, I) time-major
    if Bp != B:
        xt = jnp.pad(xt, ((0, 0), (0, Bp - B), (0, 0)))
    xflat = xt.reshape(T * Bp, I).astype(jnp.bfloat16)         # (T*Bp, I)

    args = (xflat, packed["wih_f"], packed["whh_f"], packed["b_f"],
            packed["wih_b"], packed["b_b"],
            packed["wfc1_f"], packed["wfc1_b"], packed["bfc1"],
            packed["wfc2"], packed["bfc2"])
    vmem = pl.BlockSpec(memory_space=pltpu.MemorySpace.VMEM)
    kernel = functools.partial(bilstm_kernel, T=T, Bp=Bp, H=H)
    # NOTE: gridless on purpose at these toy shapes (latency / dispatch bound).
    # When B scales toward >=128 (v5e) / >=256 (v6e, v7x) rows, add a batch grid
    # axis with dimension_semantics=("parallel",) and 128/256-row batch tiles so
    # v7x's 2nd TensorCore is used and x / gates_x become pipelined HBM->VMEM
    # blocks instead of being fully resident.
    out = pl.pallas_call(
        kernel,
        out_shape=jax.ShapeDtypeStruct((Bp, OP), jnp.float32),
        in_specs=[vmem] * len(args),
        out_specs=vmem,
    )(*args)
    return out[:B, :out_size]


# ----------------------- deterministic parameter init -----------------------
def xavier_uniform(key, shape):
    fan_out, fan_in = shape
    bound = math.sqrt(6.0 / (fan_in + fan_out))
    return jax.random.uniform(key, shape, jnp.float32, -bound, bound)


def orthogonal(key, shape):
    rows, cols = shape
    n, m = max(rows, cols), min(rows, cols)
    a = jax.random.normal(key, (n, m), jnp.float32)
    q, r = jnp.linalg.qr(a)
    q = q * jnp.sign(jnp.diagonal(r))[None, :]
    if rows < cols:
        q = q.T
    return q[:rows, :cols]


# --------------------------- pure-JAX reference ------------------------------
def reference_forward(x, params):
    B, T, _ = x.shape
    H = params["w_hh_f"].shape[1]

    def cell(x_t, h, c, wih, whh, b):
        gates = x_t @ wih.T + h @ whh.T + b
        i = jax.nn.sigmoid(gates[:, :H])
        f = jax.nn.sigmoid(gates[:, H:2 * H])
        g = jnp.tanh(gates[:, 2 * H:3 * H])
        o = jax.nn.sigmoid(gates[:, 3 * H:])
        c = f * c + i * g
        return o * jnp.tanh(c), c

    h = jnp.zeros((B, H)); c = jnp.zeros((B, H))
    bf = params["b_ih_f"] + params["b_hh_f"]
    for t in range(T):
        h, c = cell(x[:, t], h, c, params["w_ih_f"], params["w_hh_f"], bf)
    bb = params["b_ih_b"] + params["b_hh_b"]
    hb, _ = cell(x[:, T - 1], jnp.zeros((B, H)), jnp.zeros((B, H)),
                 params["w_ih_b"], params["w_hh_b"], bb)
    last = jnp.concatenate([h, hb], axis=1)
    hid = jnp.maximum(last @ params["w_fc1"].T + params["b_fc1"], 0.0)
    return hid @ params["w_fc2"].T + params["b_fc2"]


if __name__ == "__main__":
    B, T, I, H, O = 2, 8, 4, 32, 4

    key = jax.random.PRNGKey(0)
    keys = jax.random.split(key, 8)
    params = {
        "w_ih_f": xavier_uniform(keys[0], (4 * H, I)),
        "w_hh_f": orthogonal(keys[1], (4 * H, H)),
        "b_ih_f": jnp.zeros((4 * H,), jnp.float32),
        "b_hh_f": jnp.zeros((4 * H,), jnp.float32),
        "w_ih_b": xavier_uniform(keys[2], (4 * H, I)),
        "w_hh_b": orthogonal(keys[3], (4 * H, H)),
        "b_ih_b": jnp.zeros((4 * H,), jnp.float32),
        "b_hh_b": jnp.zeros((4 * H,), jnp.float32),
        "w_fc1": xavier_uniform(keys[4], (H, 2 * H)),
        "b_fc1": jnp.zeros((H,), jnp.float32),
        "w_fc2": xavier_uniform(keys[5], (O, H)),
        "b_fc2": jnp.zeros((O,), jnp.float32),
    }
    x = jax.random.normal(keys[6], (B, T, I), jnp.float32)

    packed = pack_params(params)                      # one-time weight packing
    out = jax.block_until_ready(bilstm_predictor_forward(x, packed, out_size=O))
    ref = reference_forward(x, params)
    np.testing.assert_allclose(np.asarray(out), np.asarray(ref), rtol=2e-2, atol=2e-2)
    print("KERNEL_OK")
</pallas_src>

<mosaic_0001>
module attributes {stable_mosaic.version = 11 : i64} {
  func.func @bilstm_kernel(%arg0: memref<64x4xbf16, #tpu.memory_space<vmem>>, %arg1: memref<4x128xbf16, #tpu.memory_space<vmem>>, %arg2: memref<32x128xbf16, #tpu.memory_space<vmem>>, %arg3: memref<1x128xf32, #tpu.memory_space<vmem>>, %arg4: memref<4x128xbf16, #tpu.memory_space<vmem>>, %arg5: memref<1x128xf32, #tpu.memory_space<vmem>>, %arg6: memref<32x32xbf16, #tpu.memory_space<vmem>>, %arg7: memref<32x32xbf16, #tpu.memory_space<vmem>>, %arg8: memref<1x32xf32, #tpu.memory_space<vmem>>, %arg9: memref<32x128xbf16, #tpu.memory_space<vmem>>, %arg10: memref<1x128xf32, #tpu.memory_space<vmem>>, %arg11: memref<8x128xf32, #tpu.memory_space<vmem>>) attributes {dimension_semantics = [], scalar_prefetch = 0 : i64, scratch_operands = 0 : i64, tpu.core_type = #tpu.core_type<tc>} {
    %c0 = arith.constant 0 : index
    %c0_0 = arith.constant 0 : index
    %0 = vector.load %arg0[%c0, %c0_0] : memref<64x4xbf16, #tpu.memory_space<vmem>>, vector<64x4xbf16>
    %c0_1 = arith.constant 0 : index
    %c0_2 = arith.constant 0 : index
    %1 = vector.load %arg1[%c0_1, %c0_2] : memref<4x128xbf16, #tpu.memory_space<vmem>>, vector<4x128xbf16>
    %cst = arith.constant dense<0.000000e+00> : vector<64x128xf32>
    %2 = tpu.matmul %0, %1, %cst {dimension_numbers = #tpu.dot_dimension_numbers<[1], [0], [0], [1], [0, 0, 1, 1], [], []>} : vector<64x4xbf16>, vector<4x128xbf16>, vector<64x128xf32> -> vector<64x128xf32>
    %c0_3 = arith.constant 0 : index
    %c0_4 = arith.constant 0 : index
    %3 = vector.load %arg3[%c0_3, %c0_4] : memref<1x128xf32, #tpu.memory_space<vmem>>, vector<1x128xf32>
    %4 = vector.broadcast %3 : vector<1x128xf32> to vector<64x128xf32>
    %5 = arith.addf %2, %4 : vector<64x128xf32>
    %6 = vector.extract_strided_slice %0 {offsets = [56, 0], sizes = [8, 4], strides = [1, 1]} : vector<64x4xbf16> to vector<8x4xbf16>
    %c0_5 = arith.constant 0 : index
    %c0_6 = arith.constant 0 : index
    %7 = vector.load %arg4[%c0_5, %c0_6] : memref<4x128xbf16, #tpu.memory_space<vmem>>, vector<4x128xbf16>
    %cst_7 = arith.constant dense<0.000000e+00> : vector<8x128xf32>
    %8 = tpu.matmul %6, %7, %cst_7 {dimension_numbers = #tpu.dot_dimension_numbers<[1], [0], [0], [1], [0, 0, 1, 1], [], []>} : vector<8x4xbf16>, vector<4x128xbf16>, vector<8x128xf32> -> vector<8x128xf32>
    %c0_8 = arith.constant 0 : index
    %c0_9 = arith.constant 0 : index
    %9 = vector.load %arg5[%c0_8, %c0_9] : memref<1x128xf32, #tpu.memory_space<vmem>>, vector<1x128xf32>
    %10 = vector.broadcast %9 : vector<1x128xf32> to vector<8x128xf32>
    %11 = arith.addf %8, %10 : vector<8x128xf32>
    %12 = arith.negf %11 : vector<8x128xf32>
    %13 = math.exp %12 : vector<8x128xf32>
    %cst_10 = arith.constant 1.000000e+00 : f32
    %14 = vector.broadcast %cst_10 : f32 to vector<8x128xf32>
    %15 = arith.addf %14, %13 : vector<8x128xf32>
    %16 = arith.divf %14, %15 : vector<8x128xf32>
    %17 = math.tanh %11 : vector<8x128xf32>
    %18 = vector.extract_strided_slice %16 {offsets = [0, 0], sizes = [8, 32], strides = [1, 1]} : vector<8x128xf32> to vector<8x32xf32>
    %19 = vector.extract_strided_slice %17 {offsets = [0, 64], sizes = [8, 32], strides = [1, 1]} : vector<8x128xf32> to vector<8x32xf32>
    %20 = arith.mulf %18, %19 : vector<8x32xf32>
    %21 = vector.extract_strided_slice %16 {offsets = [0, 96], sizes = [8, 32], strides = [1, 1]} : vector<8x128xf32> to vector<8x32xf32>
    %22 = math.tanh %20 : vector<8x32xf32>
    %23 = arith.mulf %21, %22 : vector<8x32xf32>
    %24 = arith.truncf %23 : vector<8x32xf32> to vector<8x32xbf16>
    %c0_11 = arith.constant 0 : index
    %c0_12 = arith.constant 0 : index
    %25 = vector.load %arg7[%c0_11, %c0_12] : memref<32x32xbf16, #tpu.memory_space<vmem>>, vector<32x32xbf16>
    %cst_13 = arith.constant dense<0.000000e+00> : vector<8x32xf32>
    %26 = tpu.matmul %24, %25, %cst_13 {dimension_numbers = #tpu.dot_dimension_numbers<[1], [0], [0], [1], [0, 0, 1, 1], [], []>} : vector<8x32xbf16>, vector<32x32xbf16>, vector<8x32xf32> -> vector<8x32xf32>
    %c0_14 = arith.constant 0 : index
    %c0_15 = arith.constant 0 : index
    %27 = vector.load %arg8[%c0_14, %c0_15] : memref<1x32xf32, #tpu.memory_space<vmem>>, vector<1x32xf32>
    %28 = vector.broadcast %27 : vector<1x32xf32> to vector<8x32xf32>
    %29 = arith.addf %26, %28 : vector<8x32xf32>
    %c0_16 = arith.constant 0 : index
    %c0_17 = arith.constant 0 : index
    %30 = vector.load %arg2[%c0_16, %c0_17] : memref<32x128xbf16, #tpu.memory_space<vmem>>, vector<32x128xbf16>
    %cst_18 = arith.constant 0.000000e+00 : f32
    %31 = vector.broadcast %cst_18 : f32 to vector<8x32xf32>
    %cst_19 = arith.constant 0.000000e+00 : f32
    %32 = vector.broadcast %cst_19 : f32 to vector<8x32xf32>
    %33 = vector.extract_strided_slice %5 {offsets = [0, 0], sizes = [8, 128], strides = [1, 1]} : vector<64x128xf32> to vector<8x128xf32>
    %34 = arith.truncf %31 : vector<8x32xf32> to vector<8x32xbf16>
    %cst_20 = arith.constant dense<0.000000e+00> : vector<8x128xf32>
    %35 = tpu.matmul %34, %30, %cst_20 {dimension_numbers = #tpu.dot_dimension_numbers<[1], [0], [0], [1], [0, 0, 1, 1], [], []>} : vector<8x32xbf16>, vector<32x128xbf16>, vector<8x128xf32> -> vector<8x128xf32>
    %36 = arith.addf %33, %35 : vector<8x128xf32>
    %37 = arith.negf %36 : vector<8x128xf32>
    %38 = math.exp %37 : vector<8x128xf32>
    %cst_21 = arith.constant 1.000000e+00 : f32
    %39 = vector.broadcast %cst_21 : f32 to vector<8x128xf32>
    %40 = arith.addf %39, %38 : vector<8x128xf32>
    %41 = arith.divf %39, %40 : vector<8x128xf32>
    %42 = math.tanh %36 : vector<8x128xf32>
    %43 = vector.extract_strided_slice %41 {offsets = [0, 32], sizes = [8, 32], strides = [1, 1]} : vector<8x128xf32> to vector<8x32xf32>
    %44 = arith.mulf %43, %32 : vector<8x32xf32>
    %45 = vector.extract_strided_slice %41 {offsets = [0, 0], sizes = [8, 32], strides = [1, 1]} : vector<8x128xf32> to vector<8x32xf32>
    %46 = vector.extract_strided_slice %42 {offsets = [0, 64], sizes = [8, 32], strides = [1, 1]} : vector<8x128xf32> to vector<8x32xf32>
    %47 = arith.mulf %45, %46 : vector<8x32xf32>
    %48 = arith.addf %44, %47 : vector<8x32xf32>
    %49 = vector.extract_strided_slice %41 {offsets = [0, 96], sizes = [8, 32], strides = [1, 1]} : vector<8x128xf32> to vector<8x32xf32>
    %50 = math.tanh %48 : vector<8x32xf32>
    %51 = arith.mulf %49, %50 : vector<8x32xf32>
    %52 = vector.extract_strided_slice %5 {offsets = [8, 0], sizes = [8, 128], strides = [1, 1]} : vector<64x128xf32> to vector<8x128xf32>
    %53 = arith.truncf %51 : vector<8x32xf32> to vector<8x32xbf16>
    %cst_22 = arith.constant dense<0.000000e+00> : vector<8x128xf32>
    %54 = tpu.matmul %53, %30, %cst_22 {dimension_numbers = #tpu.dot_dimension_numbers<[1], [0], [0], [1], [0, 0, 1, 1], [], []>} : vector<8x32xbf16>, vector<32x128xbf16>, vector<8x128xf32> -> vector<8x128xf32>
    %55 = arith.addf %52, %54 : vector<8x128xf32>
    %56 = arith.negf %55 : vector<8x128xf32>
    %57 = math.exp %56 : vector<8x128xf32>
    %cst_23 = arith.constant 1.000000e+00 : f32
    %58 = vector.broadcast %cst_23 : f32 to vector<8x128xf32>
    %59 = arith.addf %58, %57 : vector<8x128xf32>
    %60 = arith.divf %58, %59 : vector<8x128xf32>
    %61 = math.tanh %55 : vector<8x128xf32>
    %62 = vector.extract_strided_slice %60 {offsets = [0, 32], sizes = [8, 32], strides = [1, 1]} : vector<8x128xf32> to vector<8x32xf32>
    %63 = arith.mulf %62, %48 : vector<8x32xf32>
    %64 = vector.extract_strided_slice %60 {offsets = [0, 0], sizes = [8, 32], strides = [1, 1]} : vector<8x128xf32> to vector<8x32xf32>
    %65 = vector.extract_strided_slice %61 {offsets = [0, 64], sizes = [8, 32], strides = [1, 1]} : vector<8x128xf32> to vector<8x32xf32>
    %66 = arith.mulf %64, %65 : vector<8x32xf32>
    %67 = arith.addf %63, %66 : vector<8x32xf32>
    %68 = vector.extract_strided_slice %60 {offsets = [0, 96], sizes = [8, 32], strides = [1, 1]} : vector<8x128xf32> to vector<8x32xf32>
    %69 = math.tanh %67 : vector<8x32xf32>
    %70 = arith.mulf %68, %69 : vector<8x32xf32>
    %71 = vector.extract_strided_slice %5 {offsets = [16, 0], sizes = [8, 128], strides = [1, 1]} : vector<64x128xf32> to vector<8x128xf32>
    %72 = arith.truncf %70 : vector<8x32xf32> to vector<8x32xbf16>
    %cst_24 = arith.constant dense<0.000000e+00> : vector<8x128xf32>
    %73 = tpu.matmul %72, %30, %cst_24 {dimension_numbers = #tpu.dot_dimension_numbers<[1], [0], [0], [1], [0, 0, 1, 1], [], []>} : vector<8x32xbf16>, vector<32x128xbf16>, vector<8x128xf32> -> vector<8x128xf32>
    %74 = arith.addf %71, %73 : vector<8x128xf32>
    %75 = arith.negf %74 : vector<8x128xf32>
    %76 = math.exp %75 : vector<8x128xf32>
    %cst_25 = arith.constant 1.000000e+00 : f32
    %77 = vector.broadcast %cst_25 : f32 to vector<8x128xf32>
    %78 = arith.addf %77, %76 : vector<8x128xf32>
    %79 = arith.divf %77, %78 : vector<8x128xf32>
    %80 = math.tanh %74 : vector<8x128xf32>
    %81 = vector.extract_strided_slice %79 {offsets = [0, 32], sizes = [8, 32], strides = [1, 1]} : vector<8x128xf32> to vector<8x32xf32>
    %82 = arith.mulf %81, %67 : vector<8x32xf32>
    %83 = vector.extract_strided_slice %79 {offsets = [0, 0], sizes = [8, 32], strides = [1, 1]} : vector<8x128xf32> to vector<8x32xf32>
    %84 = vector.extract_strided_slice %80 {offsets = [0, 64], sizes = [8, 32], strides = [1, 1]} : vector<8x128xf32> to vector<8x32xf32>
    %85 = arith.mulf %83, %84 : vector<8x32xf32>
    %86 = arith.addf %82, %85 : vector<8x32xf32>
    %87 = vector.extract_strided_slice %79 {offsets = [0, 96], sizes = [8, 32], strides = [1, 1]} : vector<8x128xf32> to vector<8x32xf32>
    %88 = math.tanh %86 : vector<8x32xf32>
    %89 = arith.mulf %87, %88 : vector<8x32xf32>
    %90 = vector.extract_strided_slice %5 {offsets = [24, 0], sizes = [8, 128], strides = [1, 1]} : vector<64x128xf32> to vector<8x128xf32>
    %91 = arith.truncf %89 : vector<8x32xf32> to vector<8x32xbf16>
    %cst_26 = arith.constant dense<0.000000e+00> : vector<8x128xf32>
    %92 = tpu.matmul %91, %30, %cst_26 {dimension_numbers = #tpu.dot_dimension_numbers<[1], [0], [0], [1], [0, 0, 1, 1], [], []>} : vector<8x32xbf16>, vector<32x128xbf16>, vector<8x128xf32> -> vector<8x128xf32>
    %93 = arith.addf %90, %92 : vector<8x128xf32>
    %94 = arith.negf %93 : vector<8x128xf32>
    %95 = math.exp %94 : vector<8x128xf32>
    %cst_27 = arith.constant 1.000000e+00 : f32
    %96 = vector.broadcast %cst_27 : f32 to vector<8x128xf32>
    %97 = arith.addf %96, %95 : vector<8x128xf32>
    %98 = arith.divf %96, %97 : vector<8x128xf32>
    %99 = math.tanh %93 : vector<8x128xf32>
    %100 = vector.extract_strided_slice %98 {offsets = [0, 32], sizes = [8, 32], strides = [1, 1]} : vector<8x128xf32> to vector<8x32xf32>
    %101 = arith.mulf %100, %86 : vector<8x32xf32>
    %102 = vector.extract_strided_slice %98 {offsets = [0, 0], sizes = [8, 32], strides = [1, 1]} : vector<8x128xf32> to vector<8x32xf32>
    %103 = vector.extract_strided_slice %99 {offsets = [0, 64], sizes = [8, 32], strides = [1, 1]} : vector<8x128xf32> to vector<8x32xf32>
    %104 = arith.mulf %102, %103 : vector<8x32xf32>
    %105 = arith.addf %101, %104 : vector<8x32xf32>
    %106 = vector.extract_strided_slice %98 {offsets = [0, 96], sizes = [8, 32], strides = [1, 1]} : vector<8x128xf32> to vector<8x32xf32>
    %107 = math.tanh %105 : vector<8x32xf32>
    %108 = arith.mulf %106, %107 : vector<8x32xf32>
    %109 = vector.extract_strided_slice %5 {offsets = [32, 0], sizes = [8, 128], strides = [1, 1]} : vector<64x128xf32> to vector<8x128xf32>
    %110 = arith.truncf %108 : vector<8x32xf32> to vector<8x32xbf16>
    %cst_28 = arith.constant dense<0.000000e+00> : vector<8x128xf32>
    %111 = tpu.matmul %110, %30, %cst_28 {dimension_numbers = #tpu.dot_dimension_numbers<[1], [0], [0], [1], [0, 0, 1, 1], [], []>} : vector<8x32xbf16>, vector<32x128xbf16>, vector<8x128xf32> -> vector<8x128xf32>
    %112 = arith.addf %109, %111 : vector<8x128xf32>
    %113 = arith.negf %112 : vector<8x128xf32>
    %114 = math.exp %113 : vector<8x128xf32>
    %cst_29 = arith.constant 1.000000e+00 : f32
    %115 = vector.broadcast %cst_29 : f32 to vector<8x128xf32>
    %116 = arith.addf %115, %114 : vector<8x128xf32>
    %117 = arith.divf %115, %116 : vector<8x128xf32>
    %118 = math.tanh %112 : vector<8x128xf32>
    %119 = vector.extract_strided_slice %117 {offsets = [0, 32], sizes = [8, 32], strides = [1, 1]} : vector<8x128xf32> to vector<8x32xf32>
    %120 = arith.mulf %119, %105 : vector<8x32xf32>
    %121 = vector.extract_strided_slice %117 {offsets = [0, 0], sizes = [8, 32], strides = [1, 1]} : vector<8x128xf32> to vector<8x32xf32>
    %122 = vector.extract_strided_slice %118 {offsets = [0, 64], sizes = [8, 32], strides = [1, 1]} : vector<8x128xf32> to vector<8x32xf32>
    %123 = arith.mulf %121, %122 : vector<8x32xf32>
    %124 = arith.addf %120, %123 : vector<8x32xf32>
    %125 = vector.extract_strided_slice %117 {offsets = [0, 96], sizes = [8, 32], strides = [1, 1]} : vector<8x128xf32> to vector<8x32xf32>
    %126 = math.tanh %124 : vector<8x32xf32>
    %127 = arith.mulf %125, %126 : vector<8x32xf32>
    %128 = vector.extract_strided_slice %5 {offsets = [40, 0], sizes = [8, 128], strides = [1, 1]} : vector<64x128xf32> to vector<8x128xf32>
    %129 = arith.truncf %127 : vector<8x32xf32> to vector<8x32xbf16>
    %cst_30 = arith.constant dense<0.000000e+00> : vector<8x128xf32>
    %130 = tpu.matmul %129, %30, %cst_30 {dimension_numbers = #tpu.dot_dimension_numbers<[1], [0], [0], [1], [0, 0, 1, 1], [], []>} : vector<8x32xbf16>, vector<32x128xbf16>, vector<8x128xf32> -> vector<8x128xf32>
    %131 = arith.addf %128, %130 : vector<8x128xf32>
    %132 = arith.negf %131 : vector<8x128xf32>
    %133 = math.exp %132 : vector<8x128xf32>
    %cst_31 = arith.constant 1.000000e+00 : f32
    %134 = vector.broadcast %cst_31 : f32 to vector<8x128xf32>
    %135 = arith.addf %134, %133 : vector<8x128xf32>
    %136 = arith.divf %134, %135 : vector<8x128xf32>
    %137 = math.tanh %131 : vector<8x128xf32>
    %138 = vector.extract_strided_slice %136 {offsets = [0, 32], sizes = [8, 32], strides = [1, 1]} : vector<8x128xf32> to vector<8x32xf32>
    %139 = arith.mulf %138, %124 : vector<8x32xf32>
    %140 = vector.extract_strided_slice %136 {offsets = [0, 0], sizes = [8, 32], strides = [1, 1]} : vector<8x128xf32> to vector<8x32xf32>
    %141 = vector.extract_strided_slice %137 {offsets = [0, 64], sizes = [8, 32], strides = [1, 1]} : vector<8x128xf32> to vector<8x32xf32>
    %142 = arith.mulf %140, %141 : vector<8x32xf32>
    %143 = arith.addf %139, %142 : vector<8x32xf32>
    %144 = vector.extract_strided_slice %136 {offsets = [0, 96], sizes = [8, 32], strides = [1, 1]} : vector<8x128xf32> to vector<8x32xf32>
    %145 = math.tanh %143 : vector<8x32xf32>
    %146 = arith.mulf %144, %145 : vector<8x32xf32>
    %147 = vector.extract_strided_slice %5 {offsets = [48, 0], sizes = [8, 128], strides = [1, 1]} : vector<64x128xf32> to vector<8x128xf32>
    %148 = arith.truncf %146 : vector<8x32xf32> to vector<8x32xbf16>
    %cst_32 = arith.constant dense<0.000000e+00> : vector<8x128xf32>
    %149 = tpu.matmul %148, %30, %cst_32 {dimension_numbers = #tpu.dot_dimension_numbers<[1], [0], [0], [1], [0, 0, 1, 1], [], []>} : vector<8x32xbf16>, vector<32x128xbf16>, vector<8x128xf32> -> vector<8x128xf32>
    %150 = arith.addf %147, %149 : vector<8x128xf32>
    %151 = arith.negf %150 : vector<8x128xf32>
    %152 = math.exp %151 : vector<8x128xf32>
    %cst_33 = arith.constant 1.000000e+00 : f32
    %153 = vector.broadcast %cst_33 : f32 to vector<8x128xf32>
    %154 = arith.addf %153, %152 : vector<8x128xf32>
    %155 = arith.divf %153, %154 : vector<8x128xf32>
    %156 = math.tanh %150 : vector<8x128xf32>
    %157 = vector.extract_strided_slice %155 {offsets = [0, 32], sizes = [8, 32], strides = [1, 1]} : vector<8x128xf32> to vector<8x32xf32>
    %158 = arith.mulf %157, %143 : vector<8x32xf32>
    %159 = vector.extract_strided_slice %155 {offsets = [0, 0], sizes = [8, 32], strides = [1, 1]} : vector<8x128xf32> to vector<8x32xf32>
    %160 = vector.extract_strided_slice %156 {offsets = [0, 64], sizes = [8, 32], strides = [1, 1]} : vector<8x128xf32> to vector<8x32xf32>
    %161 = arith.mulf %159, %160 : vector<8x32xf32>
    %162 = arith.addf %158, %161 : vector<8x32xf32>
    %163 = vector.extract_strided_slice %155 {offsets = [0, 96], sizes = [8, 32], strides = [1, 1]} : vector<8x128xf32> to vector<8x32xf32>
    %164 = math.tanh %162 : vector<8x32xf32>
    %165 = arith.mulf %163, %164 : vector<8x32xf32>
    %166 = vector.extract_strided_slice %5 {offsets = [56, 0], sizes = [8, 128], strides = [1, 1]} : vector<64x128xf32> to vector<8x128xf32>
    %167 = arith.truncf %165 : vector<8x32xf32> to vector<8x32xbf16>
    %cst_34 = arith.constant dense<0.000000e+00> : vector<8x128xf32>
    %168 = tpu.matmul %167, %30, %cst_34 {dimension_numbers = #tpu.dot_dimension_numbers<[1], [0], [0], [1], [0, 0, 1, 1], [], []>} : vector<8x32xbf16>, vector<32x128xbf16>, vector<8x128xf32> -> vector<8x128xf32>
    %169 = arith.addf %166, %168 : vector<8x128xf32>
    %170 = arith.negf %169 : vector<8x128xf32>
    %171 = math.exp %170 : vector<8x128xf32>
    %cst_35 = arith.constant 1.000000e+00 : f32
    %172 = vector.broadcast %cst_35 : f32 to vector<8x128xf32>
    %173 = arith.addf %172, %171 : vector<8x128xf32>
    %174 = arith.divf %172, %173 : vector<8x128xf32>
    %175 = math.tanh %169 : vector<8x128xf32>
    %176 = vector.extract_strided_slice %174 {offsets = [0, 32], sizes = [8, 32], strides = [1, 1]} : vector<8x128xf32> to vector<8x32xf32>
    %177 = arith.mulf %176, %162 : vector<8x32xf32>
    %178 = vector.extract_strided_slice %174 {offsets = [0, 0], sizes = [8, 32], strides = [1, 1]} : vector<8x128xf32> to vector<8x32xf32>
    %179 = vector.extract_strided_slice %175 {offsets = [0, 64], sizes = [8, 32], strides = [1, 1]} : vector<8x128xf32> to vector<8x32xf32>
    %180 = arith.mulf %178, %179 : vector<8x32xf32>
    %181 = arith.addf %177, %180 : vector<8x32xf32>
    %182 = vector.extract_strided_slice %174 {offsets = [0, 96], sizes = [8, 32], strides = [1, 1]} : vector<8x128xf32> to vector<8x32xf32>
    %183 = math.tanh %181 : vector<8x32xf32>
    %184 = arith.mulf %182, %183 : vector<8x32xf32>
    %185 = arith.truncf %184 : vector<8x32xf32> to vector<8x32xbf16>
    %c0_36 = arith.constant 0 : index
    %c0_37 = arith.constant 0 : index
    %186 = vector.load %arg6[%c0_36, %c0_37] : memref<32x32xbf16, #tpu.memory_space<vmem>>, vector<32x32xbf16>
    %cst_38 = arith.constant dense<0.000000e+00> : vector<8x32xf32>
    %187 = tpu.matmul %185, %186, %cst_38 {dimension_numbers = #tpu.dot_dimension_numbers<[1], [0], [0], [1], [0, 0, 1, 1], [], []>} : vector<8x32xbf16>, vector<32x32xbf16>, vector<8x32xf32> -> vector<8x32xf32>
    %188 = arith.addf %187, %29 : vector<8x32xf32>
    %cst_39 = arith.constant 0.000000e+00 : f32
    %189 = vector.broadcast %cst_39 : f32 to vector<8x32xf32>
    %190 = arith.maximumf %188, %189 : vector<8x32xf32>
    %191 = arith.truncf %190 : vector<8x32xf32> to vector<8x32xbf16>
    %c0_40 = arith.constant 0 : index
    %c0_41 = arith.constant 0 : index
    %192 = vector.load %arg9[%c0_40, %c0_41] : memref<32x128xbf16, #tpu.memory_space<vmem>>, vector<32x128xbf16>
    %cst_42 = arith.constant dense<0.000000e+00> : vector<8x128xf32>
    %193 = tpu.matmul %191, %192, %cst_42 {dimension_numbers = #tpu.dot_dimension_numbers<[1], [0], [0], [1], [0, 0, 1, 1], [], []>} : vector<8x32xbf16>, vector<32x128xbf16>, vector<8x128xf32> -> vector<8x128xf32>
    %c0_43 = arith.constant 0 : index
    %c0_44 = arith.constant 0 : index
    %194 = vector.load %arg10[%c0_43, %c0_44] : memref<1x128xf32, #tpu.memory_space<vmem>>, vector<1x128xf32>
    %195 = vector.broadcast %194 : vector<1x128xf32> to vector<8x128xf32>
    %196 = arith.addf %193, %195 : vector<8x128xf32>
    %c0_45 = arith.constant 0 : index
    %c0_46 = arith.constant 0 : index
    %197 = vector.load %arg11[%c0_45, %c0_46] : memref<8x128xf32, #tpu.memory_space<vmem>>, vector<8x128xf32>
    tpu.vector_store %arg11[%c0_45, %c0_46], %196 {strides = array<i32>} : memref<8x128xf32, #tpu.memory_space<vmem>>, vector<8x128xf32>,
    return
  }
}

</mosaic_0001>

<bundles_post_ra>
// kernel: bilstm_predictor_forward.1
= control target key start
LH: loop header
LB: loop body
LE: loop exit
PB: predicated region body
PF: predicated region fallthrough
CT: control target
= control target key end

     0   :  { %16 = vsyncpa [#allocation3], 0  ;;  %s1313_s0 = inlined_call_operand.vmem [shape: bf16[64,4], index: 0, kind: input, shape index: {}]   ;;  %s1314_s1 = inlined_call_operand.vmem [shape: bf16[4,128], index: 1, kind: input, shape index: {}]   ;;  %s1315_s2 = inlined_call_operand.vmem [shape: bf16[32,128], index: 2, kind: input, shape index: {}]   ;;  %s1316_s3 = inlined_call_operand.hbm [shape: f32[1,128], index: 3, kind: input, shape index: {}]   ;;  %s1317_s4 = inlined_call_operand.vmem [shape: bf16[4,128], index: 4, kind: input, shape index: {}]   ;;  %s1318_s5 = inlined_call_operand.hbm [shape: f32[1,128], index: 5, kind: input, shape index: {}]   ;;  %s1319_s6 = inlined_call_operand.vmem [shape: bf16[32,32], index: 6, kind: input, shape index: {}]   ;;  %s1320_s7 = inlined_call_operand.vmem [shape: bf16[32,32], index: 7, kind: input, shape index: {}]   ;;  %s1321_s8 = inlined_call_operand.hbm [shape: f32[1,32], index: 8, kind: input, shape index: {}]   ;;  %s1322_s9 = inlined_call_operand.vmem [shape: bf16[32,128], index: 9, kind: input, shape index: {}]   ;;  %s1323_s10 = inlined_call_operand.hbm [shape: f32[1,128], index: 10, kind: input, shape index: {}]   ;;  %s1324_s11 = inlined_call_operand.vmem [shape: f32[8,128], index: 11, kind: output, shape index: {}]  }
   0x1   :  { %17 = vsyncpa [#allocation5], 0  ;;  %s43_s19 = sshll.u32 %s1318_s5, 4  ;;  %s44_s19 = int_to_ptr.hbm [resolvable:$true] %s43_s19 }
   0x2   :  { %18 = vsyncpa [#allocation8], 0  ;;  %s1097_s20 = smov [#allocation4]   ;;  %s30_s24 = sshll.u32 %s1316_s3, 4  ;;  %s31_s24 = int_to_ptr.hbm [resolvable:$true] %s30_s24 }
   0x3   :  { %s45_s21 = sshll.u32 %s1097_s20, 4  ;;  %s1098_s25 = smov [#allocation2]   ;;  %s46_s21 = int_to_ptr.vmem [resolvable:$true] %s45_s21 }
   0x4   :  { %48 = dma.hbm_to_vmem [thread:$0]  %s44_s19, 16, %s46_s21, [#allocation5]  }
   0x5   :  { %s32_s26 = sshll.u32 %s1098_s25, 4  ;;  %s58_s29 = sshll.u32 %s1321_s8, 4  ;;  %s33_s26 = int_to_ptr.vmem [resolvable:$true] %s32_s26  ;;  %s59_s29 = int_to_ptr.hbm [resolvable:$true] %s58_s29 }
   0x6   :  { %35 = dma.hbm_to_vmem [thread:$0]  %s31_s24, 16, %s33_s26, [#allocation3]  }
   0x7   :  { %s71_s12 = sshll.u32 %s1323_s10, 4  ;;  %s1099_s13 = smov [#allocation6]   ;;  %s72_s12 = int_to_ptr.hbm [resolvable:$true] %s71_s12 }
   0x8   :  { %s60_s14 = sshll.u32 %s1099_s13, 4  ;;  %s1100_s3 = smov [#allocation7]   ;;  %s61_s14 = int_to_ptr.vmem [resolvable:$true] %s60_s14 }
   0x9   :  { %63 = dma.hbm_to_vmem [thread:$0]  %s59_s29, 16, %s61_s14, [#allocation5]  }
   0xa   :  { %s73_s15 = sshll.u32 %s1100_s3, 4  ;;  %s74_s15 = int_to_ptr.vmem [resolvable:$true] %s73_s15 }
   0xb   :  { %76 = dma.hbm_to_vmem [thread:$0]  %s72_s12, 16, %s74_s15, [#allocation8]  }
   0xc   :  { %1091 = dma.done.wait [#allocation3], 16  }
   0xd   :  { %1092 = vsyncadd [#allocation3], 4294967280 }
   0xe   :  { %1093 = dma.done.wait [#allocation5], 32  }
   0xf   :  { %1094 = vsyncadd [#allocation5], 4294967264 }
  0x10   :  { %1095 = dma.done.wait [#allocation8], 16  }
  0x11   :  { %1096 = vsyncadd [#allocation8], 4294967280  ;;  %vm140_vm0 = vcmask 1041408   ;;  %v102_v0 = vld [vmem:[%s1314_s1] sm:$0x3]  ;;  %v1183_v1 = vld [vmem:[%s1315_s2 + $0x8] sm:$0xff] }
  0x12   :  { %v142_v2 = vsel %vm140_vm0, %v102_v0, 0  ;;  %v899_v3 = vld [vmem:[%s1313_s0] sm:$0xff]  ;;  %vm127_vm1 = vcmask 31744   ;;  %294 = vmatpush.bf16.msra.mxu3 %v1183_v1  ;;  %v1101_v5 = vmov 0   ;;  %s1102_s1 = smov 64   ;;  %vm252_vm6 = vcmask 261120  }
  0x13   :  { %v1192_v4 = vld [vmem:[%s1315_s2] sm:$0xff]  ;;  %151 = vmatpush.bf16.msra.mxu0 %v142_v2  ;;  %s1103_s2 = smov 32   ;;  %v101_v34 = vld [vmem:[%s1313_s0 + $0x1c] sm:$0xf] }
  0x14   :  { %v1201_v6 = vld [vmem:[#allocation2] ss:$0 sm:$0xff]  ;;  %v920_v45 = vld [vmem:[#allocation4] ss:$0 sm:$0xff] }
  0x15   :  { %v173_v32 = vld [vmem:[%s1317_s4] sm:$0x3]  ;;  %s1104_s4 = smov 96  }
  0x16   :  { %843 = vmatmul.msk.bf16.vlgmr.msra.gmra.mxu0 %vm127_vm1, %v899_v3  ;;  %295 = vmatpush.bf16.msra.mxu3 %v1192_v4  ;;  %v182_v33 = vsel %vm140_vm0, %v173_v32, 0  ;;  %v900_v32 = vld [vmem:[%s1313_s0 + $0x8] sm:$0xff] }
  0x17   :  { %191 = vmatpush.bf16.msra.mxu1 %v182_v33 }
  0x19   :  { %296 = vmatmul.bf16.vlgmr.msra.gmra.mxu3 %v1101_v5 }
  0x1a   :  { %468 = vmatpush.bf16.msrb.mxu3 %v1183_v1  ;;  %847 = vmatmul.msk.bf16.vlgmr.msra.gmra.mxu1 %vm127_vm1, %v101_v34 }
  0x1b   :  { %352 = vmatpush.bf16.msrb.mxu1 %v1183_v1 }
  0x1e   :  { %469 = vmatpush.bf16.msrb.mxu3 %v1192_v4 }
  0x1f   :  { %353 = vmatpush.bf16.msrb.mxu1 %v1192_v4 }
  0x22   :  { %642 = vmatpush.bf16.msra.mxu3 %v1183_v1 }
  0x23   :  { %526 = vmatpush.bf16.msra.mxu1 %v1183_v1 }
  0x26   :  { %643 = vmatpush.bf16.msra.mxu3 %v1192_v4  ;;  %844 = vmatmul.msk.bf16.gmra.mxu0 %vm127_vm1, %v900_v32 }
  0x27   :  { %527 = vmatpush.bf16.msra.mxu1 %v1192_v4 }
  0x93   :  { %v153_v7 = vpop.f32.mrf.mxu0 }
  0x94   :  { %v154_v8 = vadd.f32 %v1201_v6, %v153_v7 }
  0x97   :  { %v193_v38 = vpop.f32.mrf.mxu1 }
  0x98   :  { %v194_v48 = vadd.f32 %v920_v45, %v193_v38 }
  0x9a   :  { %v848_v51 = vmul.f32 -1.442695, %v194_v48 }
  0x9b   :  { %v155_v41 = vpop.f32.mrf.mxu0 }
  0x9c   :  { %v297_v9 = vpop.f32.mrf.mxu3  ;;  %v156_v42 = vadd.f32 %v1201_v6, %v155_v41 }
  0x9d   :  { %v301_v10 = vadd.f32 %v297_v9, %v154_v8 }
  0x9f   :  { %923 = vtanh.f32 %v301_v10  ;;  %v866_v13 = vmul.f32 -1.442695, %v301_v10  ;;  %v195_v39 = vpop.f32.mrf.mxu1 }
  0xa1   :  { %925 = vpow2.f32 %v866_v13 }
  0xa4   :  { %v299_v11 = vpop.f32.mrf.mxu3 }
  0xa5   :  { %v924_v12 = vpop.eup %923 }
  0xa6   :  { %324 = vrot.lane.b32.xlu0 %v924_v12, %s1102_s1 }
  0xa7   :  { %v926_v14 = vpop.eup %925 }
  0xa8   :  { %v305_v15 = vadd.f32 1.0, %v926_v14 }
  0xaa   :  { %927 = vrcp.f32 %v305_v15  ;;  %v317_v21 = vand.u32 2147483648, %v305_v15  ;;  %vm311_vm3 = vweird.f32 %v305_v15  ;;  %v315_v22 = vand.u32 2147483647, %v305_v15 }
  0xac   :  { %v318_v24 = vor.u32 1.1754944e-38, %v317_v21  ;;  %vm316_vm5 = vcmp.eq.f32.partialorder %v315_v22, 8.507059e+37 }
  0xb0   :  { %v928_v16 = vpop.eup %927 }
  0xb1   :  { %v307_v17 = vmul.f32 %v928_v16, %v305_v15  ;;  %vm312_vm2 = vweird.f32 %v928_v16 }
  0xb2   :  { %vm313_vm4 = vmor %vm311_vm3, %vm312_vm2 }
  0xb3   :  { %v308_v18 = vsub.f32 1.0, %v307_v17 }
  0xb5   :  { %v309_v19 = vmul.f32 %v928_v16, %v308_v18 }
  0xb7   :  { %v310_v20 = vadd.f32 %v928_v16, %v309_v19 }
  0xb9   :  { %v314_v23 = vsel %vm313_vm4, %v928_v16, %v310_v20 }
  0xba   :  { %v319_v26 = vsel %vm316_vm5, %v318_v24, %v314_v23 }
  0xbb   :  { %v322_v28 = vmul.f32 0.0, %v319_v26 }
 0x118   :  { %v325_v25 = vpop.permute.xlu0 %324 }
 0x119   :  { %v327_v27 = vmul.f32 %v325_v25, %v319_v26 }
 0x11b   :  { %329 = vrot.lane.b32.xlu0 %v327_v27, %s1103_s2  ;;  %v904_v27 = vld [vmem:[%s1320_s7 + $0x8] sm:$0xff] }
 0x11c   :  { %262 = vmatpush.bf16.msra.mxu2 %v904_v27 }
 0x18d   :  { %v330_v29 = vpop.permute.xlu0 %329 }
 0x18e   :  { %v1206_v30 = vadd.f32 %v330_v29, %v322_v28  ;;  %v903_v28 = vld [vmem:[%s1320_s7] sm:$0xff] }
 0x18f   :  { %263 = vmatpush.bf16.msra.mxu2 %v903_v28  ;;  %v901_v28 = vld [vmem:[%s1313_s0 + $0x10] sm:$0xff] }
 0x190   :  { %929 = vtanh.f32 %v1206_v30  ;;  %845 = vmatmul.msk.bf16.gmra.mxu0 %vm127_vm1, %v901_v28 }
 0x193   :  { %410 = vmatpush.bf16.msrb.mxu2 %v1183_v1 }
 0x196   :  { %v930_v31 = vpop.eup %929 }
 0x197   :  { %335 = vrot.lane.b32.xlu1 %v930_v31, %s1102_s1  ;;  %411 = vmatpush.bf16.msrb.mxu2 %v1192_v4 }
 0x209   :  { %v336_v35 = vpop.permute.xlu1 %335 }
 0x20a   :  { %v338_v36 = vmul.f32 %v336_v35, %v319_v26 }
 0x20c   :  { %v339_v37 = vpack.c.bf16 %v338_v36, %v338_v36 }
 0x20e   :  { %341 = vrot.lane.b32.xlu1 %v339_v37, %s1103_s2  ;;  %v158_v37 = vpop.f32.mrf.mxu0 }
 0x20f   :  { %v159_v38 = vadd.f32 %v1201_v6, %v158_v37 }
 0x280   :  { %v342_v40 = vpop.permute.xlu1 %341 }
 0x281   :  { %867 = vmatmul.msk.bf16.vlgmr.msrb.gmra.mxu1 %vm252_vm6, %v342_v40 }
 0x282   :  { %700 = vmatpush.bf16.msrb.mxu1 %v1183_v1 }
 0x286   :  { %701 = vmatpush.bf16.msrb.mxu1 %v1192_v4 }
 0x2fe   :  { %v355_v43 = vpop.f32.mrf.mxu1 }
 0x2ff   :  { %v359_v44 = vadd.f32 %v355_v43, %v156_v42 }
 0x301   :  { %931 = vtanh.f32 %v359_v44  ;;  %v868_v50 = vmul.f32 -1.442695, %v359_v44 }
 0x302   :  { %933 = vtanh.f32 %v194_v48 }
 0x303   :  { %935 = vpow2.f32 %v868_v50 }
 0x304   :  { %937 = vpow2.f32 %v848_v51 }
 0x306   :  { %v357_v46 = vpop.f32.mrf.mxu1 }
 0x307   :  { %v932_v47 = vpop.eup %931 }
 0x308   :  { %382 = vrot.lane.b32.xlu2 %v932_v47, %s1102_s1  ;;  %v934_v49 = vpop.eup %933 }
 0x309   :  { %v936_v52 = vpop.eup %935 }
 0x30a   :  { %v363_v53 = vadd.f32 1.0, %v936_v52  ;;  %v938_v54 = vpop.eup %937 }
 0x30b   :  { %v200_v55 = vadd.f32 1.0, %v938_v54 }
 0x30c   :  { %939 = vrcp.f32 %v363_v53  ;;  %v375_v0 = vand.u32 2147483648, %v363_v53  ;;  %vm369_vm8 = vweird.f32 %v363_v53  ;;  %v373_v2 = vand.u32 2147483647, %v363_v53 }
 0x30d   :  { %941 = vrcp.f32 %v200_v55  ;;  %vm206_vm11 = vweird.f32 %v200_v55  ;;  %v212_v10 = vand.u32 2147483648, %v200_v55  ;;  %v210_v13 = vand.u32 2147483647, %v200_v55 }
 0x30e   :  { %v376_v7 = vor.u32 1.1754944e-38, %v375_v0  ;;  %vm374_vm10 = vcmp.eq.f32.partialorder %v373_v2, 8.507059e+37  ;;  %v160_v0 = vpop.f32.mrf.mxu0 }
 0x30f   :  { %v213_v14 = vor.u32 1.1754944e-38, %v212_v10  ;;  %vm211_vm14 = vcmp.eq.f32.partialorder %v210_v13, 8.507059e+37  ;;  %v161_v2 = vadd.f32 %v1201_v6, %v160_v0 }
 0x310   :  { %218 = vrot.lane.b32.xlu2 %v934_v49, %s1102_s1 }
 0x312   :  { %v940_v56 = vpop.eup %939 }
 0x313   :  { %v365_v57 = vmul.f32 %v940_v56, %v363_v53  ;;  %v942_v59 = vpop.eup %941  ;;  %vm370_vm7 = vweird.f32 %v940_v56 }
 0x314   :  { %v202_v61 = vmul.f32 %v942_v59, %v200_v55  ;;  %vm371_vm9 = vmor %vm369_vm8, %vm370_vm7  ;;  %vm207_vm12 = vweird.f32 %v942_v59 }
 0x315   :  { %v366_v58 = vsub.f32 1.0, %v365_v57  ;;  %vm208_vm13 = vmor %vm206_vm11, %vm207_vm12 }
 0x316   :  { %v203_v63 = vsub.f32 1.0, %v202_v61 }
 0x317   :  { %v367_v60 = vmul.f32 %v940_v56, %v366_v58 }
 0x318   :  { %v204_v5 = vmul.f32 %v942_v59, %v203_v63 }
 0x319   :  { %v368_v62 = vadd.f32 %v940_v56, %v367_v60 }
 0x31a   :  { %v205_v12 = vadd.f32 %v942_v59, %v204_v5 }
 0x31b   :  { %v372_v3 = vsel %vm371_vm9, %v940_v56, %v368_v62 }
 0x31c   :  { %v377_v9 = vsel %vm374_vm10, %v376_v7, %v372_v3  ;;  %v209_v15 = vsel %vm208_vm13, %v942_v59, %v205_v12 }
 0x31d   :  { %v214_v16 = vsel %vm211_vm14, %v213_v14, %v209_v15  ;;  %v380_v20 = vmul.f32 %v377_v9, %v1206_v30 }
 0x362   :  { %v383_v8 = vpop.permute.xlu2 %382 }
 0x363   :  { %v385_v11 = vmul.f32 %v383_v8, %v377_v9 }
 0x365   :  { %387 = vrot.lane.b32.xlu0 %v385_v11, %s1103_s2 }
 0x36a   :  { %v219_v17 = vpop.permute.xlu2 %218 }
 0x36b   :  { %v221_v18 = vmul.f32 %v219_v17, %v214_v16 }
 0x36d   :  { %943 = vtanh.f32 %v221_v18 }
 0x373   :  { %v944_v19 = vpop.eup %943 }
 0x374   :  { %224 = vrot.lane.b32.xlu1 %v944_v19, %s1104_s4 }
 0x3d7   :  { %v388_v21 = vpop.permute.xlu0 %387 }
 0x3d8   :  { %v390_v22 = vadd.f32 %v388_v21, %v380_v20 }
 0x3da   :  { %945 = vtanh.f32 %v390_v22 }
 0x3e0   :  { %v946_v23 = vpop.eup %945 }
 0x3e1   :  { %393 = vrot.lane.b32.xlu2 %v946_v23, %s1102_s1 }
 0x3e6   :  { %v225_v24 = vpop.permute.xlu1 %224 }
 0x3e7   :  { %v227_v25 = vmul.f32 %v225_v24, %v214_v16 }
 0x3e9   :  { %v228_v26 = vpack.c.bf16 %v227_v25, %v227_v25 }
 0x3eb   :  { %238 = vrot.lane.b32.xlu0 %v228_v26, %s1103_s2 }
 0x43b   :  { %v394_v29 = vpop.permute.xlu2 %393 }
 0x43c   :  { %v396_v30 = vmul.f32 %v394_v29, %v377_v9 }
 0x43e   :  { %v397_v31 = vpack.c.bf16 %v396_v30, %v396_v30 }
 0x440   :  { %399 = vrot.lane.b32.xlu1 %v397_v31, %s1103_s2 }
 0x45d   :  { %v239_v33 = vpop.permute.xlu0 %238 }
 0x45e   :  { %857 = vmatmul.msk.bf16.vlgmr.msra.gmra.mxu2 %vm252_vm6, %v239_v33  ;;  %v163_v33 = vpop.f32.mrf.mxu0 }
 0x45f   :  { %584 = vmatpush.bf16.msra.mxu2 %v1183_v1 }
 0x463   :  { %585 = vmatpush.bf16.msra.mxu2 %v1192_v4 }
 0x4b2   :  { %v400_v34 = vpop.permute.xlu1 %399 }
 0x4b3   :  { %869 = vmatmul.msk.bf16.vlgmr.msrb.gmra.mxu2 %vm252_vm6, %v400_v34  ;;  %v164_v34 = vadd.f32 %v1201_v6, %v163_v33 }
 0x4e1   :  { %v1250_v35 = vpop.f32.mrf.mxu2 }
 0x4e9   :  { %v267_v36 = vpop.f32.mrf.mxu2 }
 0x536   :  { %v413_v39 = vpop.f32.mrf.mxu2 }
 0x537   :  { %v417_v40 = vadd.f32 %v413_v39, %v159_v38 }
 0x539   :  { %947 = vtanh.f32 %v417_v40  ;;  %v870_v43 = vmul.f32 -1.442695, %v417_v40 }
 0x53b   :  { %949 = vpow2.f32 %v870_v43 }
 0x53e   :  { %v415_v41 = vpop.f32.mrf.mxu2 }
 0x53f   :  { %v948_v42 = vpop.eup %947 }
 0x540   :  { %440 = vrot.lane.b32.xlu2 %v948_v42, %s1102_s1 }
 0x541   :  { %v950_v1 = vpop.eup %949 }
 0x542   :  { %v421_v4 = vadd.f32 1.0, %v950_v1 }
 0x544   :  { %951 = vrcp.f32 %v421_v4  ;;  %v433_v49 = vand.u32 2147483648, %v421_v4  ;;  %vm427_vm0 = vweird.f32 %v421_v4  ;;  %v431_v50 = vand.u32 2147483647, %v421_v4 }
 0x546   :  { %v434_v52 = vor.u32 1.1754944e-38, %v433_v49  ;;  %vm432_vm3 = vcmp.eq.f32.partialorder %v431_v50, 8.507059e+37 }
 0x54a   :  { %v952_v44 = vpop.eup %951 }
 0x54b   :  { %v423_v45 = vmul.f32 %v952_v44, %v421_v4  ;;  %vm428_vm15 = vweird.f32 %v952_v44 }
 0x54c   :  { %vm429_vm2 = vmor %vm427_vm0, %vm428_vm15 }
 0x54d   :  { %v424_v46 = vsub.f32 1.0, %v423_v45 }
 0x54f   :  { %v425_v47 = vmul.f32 %v952_v44, %v424_v46 }
 0x551   :  { %v426_v48 = vadd.f32 %v952_v44, %v425_v47 }
 0x553   :  { %v430_v51 = vsel %vm429_vm2, %v952_v44, %v426_v48 }
 0x554   :  { %v435_v54 = vsel %vm432_vm3, %v434_v52, %v430_v51 }
 0x555   :  { %v438_v56 = vmul.f32 %v435_v54, %v390_v22 }
 0x59a   :  { %v441_v53 = vpop.permute.xlu2 %440 }
 0x59b   :  { %v443_v55 = vmul.f32 %v441_v53, %v435_v54 }
 0x59d   :  { %445 = vrot.lane.b32.xlu0 %v443_v55, %s1103_s2 }
 0x60f   :  { %v446_v57 = vpop.permute.xlu0 %445 }
 0x610   :  { %v448_v58 = vadd.f32 %v446_v57, %v438_v56 }
 0x612   :  { %953 = vtanh.f32 %v448_v58 }
 0x618   :  { %v954_v59 = vpop.eup %953 }
 0x619   :  { %451 = vrot.lane.b32.xlu1 %v954_v59, %s1102_s1 }
 0x68b   :  { %v452_v60 = vpop.permute.xlu1 %451 }
 0x68c   :  { %v454_v61 = vmul.f32 %v452_v60, %v435_v54 }
 0x68e   :  { %v455_v62 = vpack.c.bf16 %v454_v61, %v454_v61  ;;  %v165_v61 = vpop.f32.mrf.mxu0 }
 0x690   :  { %457 = vrot.lane.b32.xlu2 %v455_v62, %s1103_s2  ;;  %v166_v62 = vadd.f32 %v1201_v6, %v165_v61 }
 0x6ea   :  { %v458_v63 = vpop.permute.xlu2 %457 }
 0x6eb   :  { %871 = vmatmul.msk.bf16.vlgmr.msrb.gmra.mxu3 %vm252_vm6, %v458_v63 }
 0x76e   :  { %v471_v3 = vpop.f32.mrf.mxu3 }
 0x76f   :  { %v475_v5 = vadd.f32 %v471_v3, %v161_v2 }
 0x771   :  { %955 = vtanh.f32 %v475_v5  ;;  %v872_v9 = vmul.f32 -1.442695, %v475_v5 }
 0x773   :  { %957 = vpow2.f32 %v872_v9 }
 0x776   :  { %v473_v7 = vpop.f32.mrf.mxu3 }
 0x777   :  { %v956_v8 = vpop.eup %955 }
 0x778   :  { %498 = vrot.lane.b32.xlu0 %v956_v8, %s1102_s1 }
 0x779   :  { %v958_v10 = vpop.eup %957 }
 0x77a   :  { %v479_v11 = vadd.f32 1.0, %v958_v10 }
 0x77c   :  { %959 = vrcp.f32 %v479_v11  ;;  %v491_v17 = vand.u32 2147483648, %v479_v11  ;;  %vm485_vm5 = vweird.f32 %v479_v11  ;;  %v489_v18 = vand.u32 2147483647, %v479_v11 }
 0x77e   :  { %v492_v20 = vor.u32 1.1754944e-38, %v491_v17  ;;  %vm490_vm8 = vcmp.eq.f32.partialorder %v489_v18, 8.507059e+37 }
 0x782   :  { %v960_v12 = vpop.eup %959 }
 0x783   :  { %v481_v13 = vmul.f32 %v960_v12, %v479_v11  ;;  %vm486_vm4 = vweird.f32 %v960_v12 }
 0x784   :  { %vm487_vm7 = vmor %vm485_vm5, %vm486_vm4 }
 0x785   :  { %v482_v14 = vsub.f32 1.0, %v481_v13 }
 0x787   :  { %v483_v15 = vmul.f32 %v960_v12, %v482_v14 }
 0x789   :  { %v484_v16 = vadd.f32 %v960_v12, %v483_v15 }
 0x78b   :  { %v488_v19 = vsel %vm487_vm7, %v960_v12, %v484_v16 }
 0x78c   :  { %v493_v22 = vsel %vm490_vm8, %v492_v20, %v488_v19 }
 0x78d   :  { %v496_v24 = vmul.f32 %v493_v22, %v448_v58 }
 0x7ea   :  { %v499_v21 = vpop.permute.xlu0 %498 }
 0x7eb   :  { %v501_v23 = vmul.f32 %v499_v21, %v493_v22 }
 0x7ed   :  { %503 = vrot.lane.b32.xlu1 %v501_v23, %s1103_s2 }
 0x85f   :  { %v504_v25 = vpop.permute.xlu1 %503 }
 0x860   :  { %v506_v26 = vadd.f32 %v504_v25, %v496_v24  ;;  %v902_v25 = vld [vmem:[%s1313_s0 + $0x18] sm:$0xff] }
 0x861   :  { %846 = vmatmul.msk.bf16.gmra.mxu0 %vm127_vm1, %v902_v25 }
 0x862   :  { %961 = vtanh.f32 %v506_v26 }
 0x868   :  { %v962_v27 = vpop.eup %961 }
 0x869   :  { %509 = vrot.lane.b32.xlu2 %v962_v27, %s1102_s1 }
 0x8c3   :  { %v510_v29 = vpop.permute.xlu2 %509 }
 0x8c4   :  { %v512_v30 = vmul.f32 %v510_v29, %v493_v22 }
 0x8c6   :  { %v513_v31 = vpack.c.bf16 %v512_v30, %v512_v30 }
 0x8c8   :  { %515 = vrot.lane.b32.xlu0 %v513_v31, %s1103_s2 }
 0x8de   :  { %v168_v30 = vpop.f32.mrf.mxu0 }
 0x8df   :  { %v169_v31 = vadd.f32 %v1201_v6, %v168_v30 }
 0x93a   :  { %v516_v32 = vpop.permute.xlu0 %515 }
 0x93b   :  { %873 = vmatmul.msk.bf16.vlgmr.msra.gmra.mxu1 %vm252_vm6, %v516_v32 }
 0x9b8   :  { %v529_v36 = vpop.f32.mrf.mxu1 }
 0x9b9   :  { %v533_v37 = vadd.f32 %v529_v36, %v164_v34 }
 0x9bb   :  { %963 = vtanh.f32 %v533_v37  ;;  %v874_v40 = vmul.f32 -1.442695, %v533_v37 }
 0x9bd   :  { %965 = vpow2.f32 %v874_v40 }
 0x9c0   :  { %v531_v38 = vpop.f32.mrf.mxu1 }
 0x9c1   :  { %v964_v39 = vpop.eup %963 }
 0x9c2   :  { %556 = vrot.lane.b32.xlu1 %v964_v39, %s1102_s1 }
 0x9c3   :  { %v966_v41 = vpop.eup %965 }
 0x9c4   :  { %v537_v42 = vadd.f32 1.0, %v966_v41 }
 0x9c6   :  { %967 = vrcp.f32 %v537_v42  ;;  %v549_v46 = vand.u32 2147483648, %v537_v42  ;;  %vm543_vm10 = vweird.f32 %v537_v42  ;;  %v547_v47 = vand.u32 2147483647, %v537_v42 }
 0x9c8   :  { %v550_v49 = vor.u32 1.1754944e-38, %v549_v46  ;;  %vm548_vm12 = vcmp.eq.f32.partialorder %v547_v47, 8.507059e+37 }
 0x9cc   :  { %v968_v43 = vpop.eup %967 }
 0x9cd   :  { %v539_v1 = vmul.f32 %v968_v43, %v537_v42  ;;  %vm544_vm9 = vweird.f32 %v968_v43 }
 0x9ce   :  { %vm545_vm11 = vmor %vm543_vm10, %vm544_vm9 }
 0x9cf   :  { %v540_v4 = vsub.f32 1.0, %v539_v1 }
 0x9d1   :  { %v541_v44 = vmul.f32 %v968_v43, %v540_v4 }
 0x9d3   :  { %v542_v45 = vadd.f32 %v968_v43, %v541_v44 }
 0x9d5   :  { %v546_v48 = vsel %vm545_vm11, %v968_v43, %v542_v45 }
 0x9d6   :  { %v551_v51 = vsel %vm548_vm12, %v550_v49, %v546_v48 }
 0x9d7   :  { %v554_v53 = vmul.f32 %v551_v51, %v506_v26 }
 0xa34   :  { %v557_v50 = vpop.permute.xlu1 %556 }
 0xa35   :  { %v559_v52 = vmul.f32 %v557_v50, %v551_v51 }
 0xa37   :  { %561 = vrot.lane.b32.xlu2 %v559_v52, %s1103_s2 }
 0xa91   :  { %v562_v54 = vpop.permute.xlu2 %561 }
 0xa92   :  { %v564_v55 = vadd.f32 %v562_v54, %v554_v53 }
 0xa94   :  { %969 = vtanh.f32 %v564_v55 }
 0xa9a   :  { %v970_v56 = vpop.eup %969 }
 0xa9b   :  { %567 = vrot.lane.b32.xlu0 %v970_v56, %s1102_s1 }
 0xb0d   :  { %v568_v57 = vpop.permute.xlu0 %567 }
 0xb0e   :  { %v570_v58 = vmul.f32 %v568_v57, %v551_v51 }
 0xb10   :  { %v571_v59 = vpack.c.bf16 %v570_v58, %v570_v58  ;;  %v170_v58 = vpop.f32.mrf.mxu0 }
 0xb12   :  { %573 = vrot.lane.b32.xlu1 %v571_v59, %s1103_s2  ;;  %v171_v59 = vadd.f32 %v1201_v6, %v170_v58 }
 0xb84   :  { %v574_v60 = vpop.permute.xlu1 %573 }
 0xb85   :  { %875 = vmatmul.msk.bf16.vlgmr.msra.gmra.mxu2 %vm252_vm6, %v574_v60 }
 0xc08   :  { %v587_v63 = vpop.f32.mrf.mxu2 }
 0xc09   :  { %v591_v0 = vadd.f32 %v587_v63, %v166_v62 }
 0xc0b   :  { %971 = vtanh.f32 %v591_v0  ;;  %v876_v5 = vmul.f32 -1.442695, %v591_v0 }
 0xc0d   :  { %973 = vpow2.f32 %v876_v5 }
 0xc10   :  { %v589_v2 = vpop.f32.mrf.mxu2 }
 0xc11   :  { %v972_v3 = vpop.eup %971 }
 0xc12   :  { %614 = vrot.lane.b32.xlu2 %v972_v3, %s1102_s1 }
 0xc13   :  { %v974_v7 = vpop.eup %973 }
 0xc14   :  { %v595_v8 = vadd.f32 1.0, %v974_v7 }
 0xc16   :  { %975 = vrcp.f32 %v595_v8  ;;  %v607_v14 = vand.u32 2147483648, %v595_v8  ;;  %vm601_vm14 = vweird.f32 %v595_v8  ;;  %v605_v15 = vand.u32 2147483647, %v595_v8 }
 0xc18   :  { %v608_v17 = vor.u32 1.1754944e-38, %v607_v14  ;;  %vm606_vm0 = vcmp.eq.f32.partialorder %v605_v15, 8.507059e+37 }
 0xc1c   :  { %v976_v9 = vpop.eup %975 }
 0xc1d   :  { %v597_v10 = vmul.f32 %v976_v9, %v595_v8  ;;  %vm602_vm13 = vweird.f32 %v976_v9 }
 0xc1e   :  { %vm603_vm15 = vmor %vm601_vm14, %vm602_vm13 }
 0xc1f   :  { %v598_v11 = vsub.f32 1.0, %v597_v10 }
 0xc21   :  { %v599_v12 = vmul.f32 %v976_v9, %v598_v11 }
 0xc23   :  { %v600_v13 = vadd.f32 %v976_v9, %v599_v12 }
 0xc25   :  { %v604_v16 = vsel %vm603_vm15, %v976_v9, %v600_v13 }
 0xc26   :  { %v609_v19 = vsel %vm606_vm0, %v608_v17, %v604_v16 }
 0xc27   :  { %v612_v21 = vmul.f32 %v609_v19, %v564_v55 }
 0xc6c   :  { %v615_v18 = vpop.permute.xlu2 %614 }
 0xc6d   :  { %v617_v20 = vmul.f32 %v615_v18, %v609_v19 }
 0xc6f   :  { %619 = vrot.lane.b32.xlu0 %v617_v20, %s1103_s2 }
 0xce1   :  { %v620_v22 = vpop.permute.xlu0 %619 }
 0xce2   :  { %v622_v23 = vadd.f32 %v620_v22, %v612_v21  ;;  %v908_v21 = vld [vmem:[%s1319_s6 + $0x8] sm:$0xff]  ;;  %v907_v22 = vld [vmem:[%s1319_s6] sm:$0xff] }
 0xce3   :  { %774 = vmatpush.bf16.msrb.mxu2 %v908_v21 }
 0xce4   :  { %977 = vtanh.f32 %v622_v23 }
 0xce7   :  { %775 = vmatpush.bf16.msrb.mxu2 %v907_v22 }
 0xcea   :  { %v978_v24 = vpop.eup %977 }
 0xceb   :  { %625 = vrot.lane.b32.xlu1 %v978_v24, %s1102_s1 }
 0xd5d   :  { %v626_v26 = vpop.permute.xlu1 %625 }
 0xd5e   :  { %v628_v27 = vmul.f32 %v626_v26, %v609_v19  ;;  %v910_v26 = vld [vmem:[%s1322_s9 + $0x8] sm:$0xff] }
 0xd5f   :  { %812 = vmatpush.bf16.msrb.mxu3 %v910_v26 }
 0xd60   :  { %v629_v28 = vpack.c.bf16 %v628_v27, %v628_v27  ;;  %v909_v27 = vld [vmem:[%s1322_s9] sm:$0xff] }
 0xd62   :  { %631 = vrot.lane.b32.xlu2 %v629_v28, %s1103_s2 }
 0xd63   :  { %813 = vmatpush.bf16.msrb.mxu3 %v909_v27 }
 0xdbc   :  { %v632_v29 = vpop.permute.xlu2 %631 }
 0xdbd   :  { %877 = vmatmul.msk.bf16.vlgmr.msra.gmra.mxu3 %vm252_vm6, %v632_v29  ;;  %v921_v29 = vld [vmem:[#allocation6] ss:$0 sm:$0xff] }
 0xdbe   :  { %v266_v30 = vadd.f32 %v921_v29, %v1250_v35 }
 0xe40   :  { %v645_v32 = vpop.f32.mrf.mxu3 }
 0xe41   :  { %v649_v33 = vadd.f32 %v645_v32, %v169_v31 }
 0xe43   :  { %979 = vtanh.f32 %v649_v33  ;;  %v878_v37 = vmul.f32 -1.442695, %v649_v33 }
 0xe45   :  { %981 = vpow2.f32 %v878_v37  ;;  %v922_v37 = vld [vmem:[#allocation7] ss:$0 sm:$0xff] }
 0xe48   :  { %v647_v34 = vpop.f32.mrf.mxu3 }
 0xe49   :  { %v980_v36 = vpop.eup %979 }
 0xe4a   :  { %672 = vrot.lane.b32.xlu0 %v980_v36, %s1102_s1 }
 0xe4b   :  { %v982_v38 = vpop.eup %981 }
 0xe4c   :  { %v653_v39 = vadd.f32 1.0, %v982_v38 }
 0xe4e   :  { %983 = vrcp.f32 %v653_v39  ;;  %v665_v4 = vand.u32 2147483648, %v653_v39  ;;  %vm659_vm2 = vweird.f32 %v653_v39  ;;  %v663_v44 = vand.u32 2147483647, %v653_v39 }
 0xe50   :  { %v666_v46 = vor.u32 1.1754944e-38, %v665_v4  ;;  %vm664_vm4 = vcmp.eq.f32.partialorder %v663_v44, 8.507059e+37 }
 0xe54   :  { %v984_v40 = vpop.eup %983 }
 0xe55   :  { %v655_v41 = vmul.f32 %v984_v40, %v653_v39  ;;  %vm660_vm1 = vweird.f32 %v984_v40 }
 0xe56   :  { %vm661_vm3 = vmor %vm659_vm2, %vm660_vm1 }
 0xe57   :  { %v656_v42 = vsub.f32 1.0, %v655_v41 }
 0xe59   :  { %v657_v43 = vmul.f32 %v984_v40, %v656_v42 }
 0xe5b   :  { %v658_v1 = vadd.f32 %v984_v40, %v657_v43 }
 0xe5d   :  { %v662_v45 = vsel %vm661_vm3, %v984_v40, %v658_v1 }
 0xe5e   :  { %v667_v48 = vsel %vm664_vm4, %v666_v46, %v662_v45 }
 0xe5f   :  { %v670_v50 = vmul.f32 %v667_v48, %v622_v23 }
 0xebc   :  { %v673_v47 = vpop.permute.xlu0 %672 }
 0xebd   :  { %v675_v49 = vmul.f32 %v673_v47, %v667_v48 }
 0xebf   :  { %677 = vrot.lane.b32.xlu1 %v675_v49, %s1103_s2 }
 0xf31   :  { %v678_v51 = vpop.permute.xlu1 %677 }
 0xf32   :  { %v680_v52 = vadd.f32 %v678_v51, %v670_v50 }
 0xf34   :  { %985 = vtanh.f32 %v680_v52 }
 0xf3a   :  { %v986_v53 = vpop.eup %985 }
 0xf3b   :  { %683 = vrot.lane.b32.xlu2 %v986_v53, %s1102_s1 }
 0xf95   :  { %v684_v54 = vpop.permute.xlu2 %683 }
 0xf96   :  { %v686_v55 = vmul.f32 %v684_v54, %v667_v48 }
 0xf98   :  { %v687_v56 = vpack.c.bf16 %v686_v55, %v686_v55 }
 0xf9a   :  { %689 = vrot.lane.b32.xlu0 %v687_v56, %s1103_s2 }
0x100c   :  { %v690_v57 = vpop.permute.xlu0 %689 }
0x100d   :  { %879 = vmatmul.msk.bf16.vlgmr.msrb.gmra.mxu1 %vm252_vm6, %v690_v57 }
0x108a   :  { %v703_v60 = vpop.f32.mrf.mxu1 }
0x108b   :  { %v707_v61 = vadd.f32 %v703_v60, %v171_v59 }
0x108d   :  { %987 = vtanh.f32 %v707_v61  ;;  %v880_v0 = vmul.f32 -1.442695, %v707_v61 }
0x108f   :  { %989 = vpow2.f32 %v880_v0 }
0x1092   :  { %v705_v62 = vpop.f32.mrf.mxu1 }
0x1093   :  { %v988_v63 = vpop.eup %987 }
0x1094   :  { %730 = vrot.lane.b32.xlu1 %v988_v63, %s1102_s1 }
0x1095   :  { %v990_v2 = vpop.eup %989 }
0x1096   :  { %v711_v3 = vadd.f32 1.0, %v990_v2 }
0x1098   :  { %991 = vrcp.f32 %v711_v3  ;;  %v723_v11 = vand.u32 2147483648, %v711_v3  ;;  %vm717_vm7 = vweird.f32 %v711_v3  ;;  %v721_v6 = vand.u32 2147483647, %v711_v3 }
0x109a   :  { %v724_v13 = vor.u32 1.1754944e-38, %v723_v11  ;;  %vm722_vm9 = vcmp.eq.f32.partialorder %v721_v6, 8.507059e+37 }
0x109e   :  { %v992_v5 = vpop.eup %991 }
0x109f   :  { %v713_v7 = vmul.f32 %v992_v5, %v711_v3  ;;  %vm718_vm5 = vweird.f32 %v992_v5 }
0x10a0   :  { %vm719_vm8 = vmor %vm717_vm7, %vm718_vm5 }
0x10a1   :  { %v714_v8 = vsub.f32 1.0, %v713_v7 }
0x10a3   :  { %v715_v9 = vmul.f32 %v992_v5, %v714_v8 }
0x10a5   :  { %v716_v10 = vadd.f32 %v992_v5, %v715_v9 }
0x10a7   :  { %v720_v12 = vsel %vm719_vm8, %v992_v5, %v716_v10 }
0x10a8   :  { %v725_v15 = vsel %vm722_vm9, %v724_v13, %v720_v12 }
0x10a9   :  { %v728_v17 = vmul.f32 %v725_v15, %v680_v52 }
0x1106   :  { %v731_v14 = vpop.permute.xlu1 %730 }
0x1107   :  { %v733_v16 = vmul.f32 %v731_v14, %v725_v15 }
0x1109   :  { %735 = vrot.lane.b32.xlu2 %v733_v16, %s1103_s2 }
0x1163   :  { %v736_v18 = vpop.permute.xlu2 %735 }
0x1164   :  { %v738_v19 = vadd.f32 %v736_v18, %v728_v17 }
0x1166   :  { %993 = vtanh.f32 %v738_v19 }
0x116c   :  { %v994_v20 = vpop.eup %993 }
0x116d   :  { %741 = vrot.lane.b32.xlu0 %v994_v20, %s1102_s1 }
0x11df   :  { %v742_v23 = vpop.permute.xlu0 %741 }
0x11e0   :  { %v744_v24 = vmul.f32 %v742_v23, %v725_v15 }
0x11e2   :  { %v745_v25 = vpack.c.bf16 %v744_v24, %v744_v24 }
0x11e4   :  { %751 = vrot.lane.b32.xlu1 %v745_v25, %s1103_s2 }
0x1256   :  { %v752_v28 = vpop.permute.xlu1 %751 }
0x1257   :  { %889 = vmatmul.msk.bf16.vlgmr.msrb.gmra.mxu2 %vm252_vm6, %v752_v28 }
0x12da   :  { %v777_v31 = vpop.f32.mrf.mxu2 }
0x12db   :  { %v778_v32 = vadd.f32 %v777_v31, %v266_v30 }
0x12dd   :  { %v781_v33 = vmax.f32 %v778_v32, 0.0 }
0x12df   :  { %v782_v34 = vpack.c.bf16 %v781_v33, %v781_v33 }
0x12e1   :  { %898 = vmatmul.msk.bf16.vlgmr.msrb.gmra.mxu3 %vm252_vm6, %v782_v34 }
0x12e2   :  { %v779_v36 = vpop.f32.mrf.mxu2 }
0x1364   :  { %v815_v38 = vpop.f32.mrf.mxu3 }
0x1365   :  { %v816_v39 = vadd.f32 %v922_v37, %v815_v38 }
0x1367   :  { %819 = vst [vmem:[%s1324_s11] sm:$0xff] %v816_v39 }
0x136c   :  { %v817_v40 = vpop.f32.mrf.mxu3 }
0x136d   :  { %824 = vsyncpa [#allocation3], 1 }
0x136e   :  { %825 = vsyncpa [#allocation5], 1 }
0x136f   :  { %826 = vsyncpa [#allocation8], 1 }

</bundles_post_ra>
